<compile_context>
chip_gen: v7x
topology: tpu7x:2x2x1
jax: 0.10.0
libtpu: 0.0.40
codegen_flags: <defaults>
</compile_context>

<pallas_src>
import functools

import jax
import jax.numpy as jnp
from jax.experimental import pallas as pl
from jax.experimental.pallas import tpu as pltpu


def _identity_copy_kernel(x_ref, o_ref):
    # Straight tile copy: load the VMEM block, store it to the output block.
    o_ref[...] = x_ref[...]


def _identity_copy(x, *, block_bytes=1 << 20):
    """Tiled identity copy of an arbitrary-shaped array through Pallas."""
    if x.size == 0:
        return x

    orig_shape = x.shape

    # Flatten to 2D.  Grow the last (lane) dim while the leading dim is even
    # so the output is lane-dense (>=512 wide when possible) -> unmasked vst.
    # This is a pure metadata reshape (row-major contiguous), no data movement.
    d = orig_shape[-1] if x.ndim else 1
    m = x.size // d
    while d < 512 and m % 2 == 0:
        d *= 2
        m //= 2
    x2d = x.reshape(m, d)

    itemsize = jnp.dtype(x.dtype).itemsize
    # Rows per block from a ~block_bytes budget; multiple of 8 (sublane tile).
    # Double-buffered in + out blocks ≈ 4 * block_bytes VMEM, well under limit.
    tm = (block_bytes // max(d * itemsize, 1)) // 8 * 8
    tm = max(8, tm)
    if m <= tm:
        tm = m  # single block == full array dims; no (8,128) constraint.
    # TODO(synk): if activation_dim were enormous (>~1M f32 lanes) the lane
    # axis would also need tiling; irrelevant for IdentityDict-sized inputs.

    grid = (pl.cdiv(m, tm),)  # partial last block handled by Pallas masking

    y = pl.pallas_call(
        _identity_copy_kernel,
        out_shape=jax.ShapeDtypeStruct((m, d), x.dtype),
        grid_spec=pltpu.PrefetchScalarGridSpec(
            num_scalar_prefetch=0,
            grid=grid,
            in_specs=[pl.BlockSpec((tm, d), lambda i: (i, 0))],
            out_specs=pl.BlockSpec((tm, d), lambda i: (i, 0)),
        ),
        compiler_params=pltpu.CompilerParams(
            dimension_semantics=("parallel",)),
    )(x2d)

    return y.reshape(orig_shape)


def identity_dict_forward(x, output_features=False, ghost_mask=None,
                          *, block_bytes=1 << 20):
    """Pallas equivalent of IdentityDict.forward."""
    del ghost_mask  # accepted for signature parity, unused (as in the module)
    y = _identity_copy(x, block_bytes=block_bytes)
    if output_features:
        # Same array twice — mirrors the PyTorch module returning (x, x).
        return y, y
    return y


def identity_dict_encode(x, *, block_bytes=1 << 20):
    # encode(x) = x
    return _identity_copy(x, block_bytes=block_bytes)


def identity_dict_decode(f, *, block_bytes=1 << 20):
    # decode(f) = f
    return _identity_copy(f, block_bytes=block_bytes)


if __name__ == "__main__":
    key = jax.random.PRNGKey(0)
    batch, seq, d_model = 2, 8, 128          # activation_dim = dict_size = 128
    x = jax.random.normal(key, (batch, seq, d_model), dtype=jnp.float32)

    # output_features=True path: (x, x)
    fwd_feats = jax.jit(functools.partial(identity_dict_forward,
                                          output_features=True))
    y, feats = fwd_feats(x)
    jax.block_until_ready((y, feats))
    assert y.shape == x.shape and feats.shape == x.shape
    assert jnp.array_equal(y, x), "forward output mismatch"
    assert jnp.array_equal(feats, x), "features output mismatch"

    # output_features=False path: x
    y2 = jax.block_until_ready(jax.jit(identity_dict_forward)(x))
    assert jnp.array_equal(y2, x), "single-output forward mismatch"

    # encode / decode are the same identity kernel
    e = jax.block_until_ready(jax.jit(identity_dict_encode)(x))
    d = jax.block_until_ready(jax.jit(identity_dict_decode)(e))
    assert jnp.array_equal(e, x) and jnp.array_equal(d, x)

    # Odd (non-8-multiple) leading size, odd row count after flattening.
    x_odd = jax.random.normal(jax.random.PRNGKey(1), (3, 5, d_model),
                              dtype=jnp.float32)
    y_odd = jax.block_until_ready(jax.jit(identity_dict_forward)(x_odd))
    assert jnp.array_equal(y_odd, x_odd), "odd-shape forward mismatch"

    # Force the multi-block path with a partial last block (no wrapper pad).
    x_big = jax.random.normal(jax.random.PRNGKey(2), (500, d_model),
                              dtype=jnp.float32)
    y_big = jax.block_until_ready(
        jax.jit(functools.partial(identity_dict_forward,
                                  block_bytes=1 << 16))(x_big))
    assert jnp.array_equal(y_big, x_big), "partial-block forward mismatch"

    print("KERNEL_OK")
</pallas_src>

<mosaic_0001>
module attributes {stable_mosaic.version = 11 : i64} {
  func.func @_identity_copy_kernel(%arg0: i32, %arg1: memref<4x512xf32, #tpu.memory_space<vmem>>, %arg2: memref<4x512xf32, #tpu.memory_space<vmem>>) attributes {dimension_semantics = [#tpu.dimension_semantics<parallel>], iteration_bounds = array<i64: 1>, scalar_prefetch = 0 : i64, scratch_operands = 0 : i64, tpu.core_type = #tpu.core_type<tc>, window_params = [{transform_indices = @transform_0, window_bounds = array<i64: 4, 512>}, {transform_indices = @transform_1, window_bounds = array<i64: 4, 512>}]} {
    %c0 = arith.constant 0 : index
    %c0_0 = arith.constant 0 : index
    %0 = vector.load %arg1[%c0, %c0_0] : memref<4x512xf32, #tpu.memory_space<vmem>>, vector<4x512xf32>
    %c0_1 = arith.constant 0 : index
    %c0_2 = arith.constant 0 : index
    %1 = vector.load %arg2[%c0_1, %c0_2] : memref<4x512xf32, #tpu.memory_space<vmem>>, vector<4x512xf32>
    tpu.vector_store %arg2[%c0_1, %c0_2], %0 {strides = array<i32>} : memref<4x512xf32, #tpu.memory_space<vmem>>, vector<4x512xf32>,
    return
  }
  func.func @transform_0(%arg0: i32) -> (i32, i32) {
    %c0_i32 = arith.constant 0 : i32
    %c0_i32_0 = arith.constant 0 : i32
    return %arg0, %c0_i32 : i32, i32
  }
  func.func @transform_1(%arg0: i32) -> (i32, i32) {
    %c0_i32 = arith.constant 0 : i32
    %c0_i32_0 = arith.constant 0 : i32
    return %arg0, %c0_i32 : i32, i32
  }
}

</mosaic_0001>

<bundles_post_ra>
// kernel: identity_dict_forward.1
= control target key start
LH: loop header
LB: loop body
LE: loop exit
PB: predicated region body
PF: predicated region fallthrough
CT: control target
= control target key end

     0   :  { %s38_s0 = inlined_call_operand.vmem [shape: f32[4,512], index: 0, kind: input, shape index: {}]   ;;  %s39_s1 = inlined_call_operand.vmem [shape: f32[4,512], index: 1, kind: output, shape index: {}]  }
   0x1   :  { %v8_v0 = vld [vmem:[%s38_s0] sm:$0xff]  ;;  %v9_v1 = vld [vmem:[%s38_s0 + $0x8] sm:$0xff] }
   0x2   :  { %10 = vst [vmem:[%s39_s1] sm:$0xff] %v8_v0  ;;  %11 = vst [vmem:[%s39_s1 + $0x8] sm:$0xff] %v9_v1 }

</bundles_post_ra>
